<compile_context>
chip_gen: v5e
topology: v5e:2x2
jax: 0.10.0
libtpu: 0.0.40
codegen_flags: <defaults>
</compile_context>

<pallas_src>
import jax
import jax.numpy as jnp
from jax.experimental import pallas as pl
from jax.experimental.pallas import tpu as pltpu

# ----------------------------- problem sizes --------------------------------
BATCH = 8          # batch size (sublane-aligned)
IN_SIZE = 32       # encoder input feature size
ENC_HID = 64       # encoder.output_shape[-1]
Z_SIZE = 32        # decoder.input_shape[1]
DEC_OUT = 32       # decoder output feature size
EPSILON_STD = 1.0  # module arg
SAMPLE_Z = True    # module arg
VAR_EPS = 1e-4     # hard-coded `eps` in forward()

# lane layout of the packed [B, 128] output slab:  dec | mu | std | z
OUT_WIDTH = 128
MU_LO, MU_HI = DEC_OUT, DEC_OUT + Z_SIZE              # 32:64
STD_LO, STD_HI = MU_HI, MU_HI + Z_SIZE                # 64:96
Z_LO, Z_HI = STD_HI, STD_HI + Z_SIZE                  # 96:128
LANE_KEEP = STD_LO                                    # lanes < 64 keep `mid`

assert IN_SIZE == 32 and ENC_HID == 64 and Z_SIZE == 32 and DEC_OUT == 32
assert Z_HI == OUT_WIDTH == 128


# ------------------------------- kernel --------------------------------------
def vae_fwd_kernel(xn_ref, w_ref, b_ref, out_ref):
    # xn_ref : [B, 128] f32  = x | 0 | 1 | eps_std*noise   (lane quarters)
    # w_ref  : [3, 128, 128] bf16  (encoder / head / decoder+passthrough)
    # b_ref  : [3, 128] f32
    # out_ref: [B, 128] f32  = dec | mu | std | z
    xn_f32 = xn_ref[...]                                        # [B, 128] f32
    xn_bf16 = xn_f32.astype(jnp.bfloat16)

    # encoder: Linear + ReLU.  Only rows 0:IN_SIZE of w_ref[0] are nonzero,
    # so the ones / noise lanes of xn contribute nothing.
    h = jnp.dot(xn_bf16, w_ref[0], preferred_element_type=jnp.float32)
    h = jnp.maximum(h + b_ref[0:1, :], 0.0)                     # [B, 128] f32

    # head matmul: results land at final lane offsets.
    #   mid = [ 0 | mu | log_var | log_var ]
    mid = jnp.dot(h.astype(jnp.bfloat16), w_ref[1],
                  preferred_element_type=jnp.float32) + b_ref[1:2, :]

    # elementwise in f32:
    #   sq = mid^2 + 1e-4  ->  std lives in its lanes, lv^2+eps in the z lanes
    #   pre = [ 0 | mu | std | eps_std*std*noise ]
    #     (z lanes of xn already hold eps_std*noise; std lanes hold 1.0)
    sq = mid * mid + VAR_EPS
    lane = jax.lax.broadcasted_iota(jnp.int32, mid.shape, 1)
    pre = jnp.where(lane < LANE_KEEP, mid, sq * xn_f32)

    # final [128,128] matmul folds the decoder and the mu/std/z identity
    # passthroughs:  out = [ z@dec_w+dec_b | mu | std | z ]  with z = mu + d.
    out_ref[...] = jnp.dot(pre.astype(jnp.bfloat16), w_ref[2],
                           preferred_element_type=jnp.float32) + b_ref[2:3, :]


# --------------------------- one-time param packing ---------------------------
def pack_params(params):
    """Pack the 8 small parameter tensors into (w_slab [3,128,128] bf16,
    b_slab [3,128] f32). Call ONCE per parameter set, not per forward call."""
    eye = jnp.eye(Z_SIZE, dtype=jnp.float32)

    # encoder weight: x rows -> encoder lanes 0:ENC_HID, everything else zero.
    w0 = jnp.zeros((OUT_WIDTH, OUT_WIDTH), jnp.float32)
    w0 = w0.at[:IN_SIZE, :ENC_HID].set(params["enc_w"])

    # head weight: h rows -> mu at 32:64, log_var at 64:96 and (copy) 96:128.
    w1 = jnp.zeros((OUT_WIDTH, OUT_WIDTH), jnp.float32)
    w1 = w1.at[:ENC_HID, MU_LO:MU_HI].set(params["mu_w"])
    w1 = w1.at[:ENC_HID, STD_LO:STD_HI].set(params["lv_w"])
    w1 = w1.at[:ENC_HID, Z_LO:Z_HI].set(params["lv_w"])

    # final weight: decoder (z = mu + d) into lanes 0:32 + identity passthroughs.
    w2 = jnp.zeros((OUT_WIDTH, OUT_WIDTH), jnp.float32)
    w2 = w2.at[MU_LO:MU_HI, 0:DEC_OUT].set(params["dec_w"])   # mu -> dec
    w2 = w2.at[Z_LO:Z_HI, 0:DEC_OUT].set(params["dec_w"])     # d  -> dec
    w2 = w2.at[MU_LO:MU_HI, MU_LO:MU_HI].set(eye)             # mu passthrough
    w2 = w2.at[STD_LO:STD_HI, STD_LO:STD_HI].set(eye)         # std passthrough
    w2 = w2.at[MU_LO:MU_HI, Z_LO:Z_HI].set(eye)               # z = mu + d
    w2 = w2.at[Z_LO:Z_HI, Z_LO:Z_HI].set(eye)

    w_slab = jnp.stack([w0, w1, w2], axis=0).astype(jnp.bfloat16)  # [3,128,128]

    b0 = jnp.zeros((OUT_WIDTH,), jnp.float32).at[:ENC_HID].set(
        params["enc_b"].reshape(-1))
    b1 = jnp.zeros((OUT_WIDTH,), jnp.float32)
    b1 = b1.at[MU_LO:MU_HI].set(params["mu_b"].reshape(-1))
    b1 = b1.at[STD_LO:STD_HI].set(params["lv_b"].reshape(-1))
    b1 = b1.at[Z_LO:Z_HI].set(params["lv_b"].reshape(-1))
    b2 = jnp.zeros((OUT_WIDTH,), jnp.float32).at[:DEC_OUT].set(
        params["dec_b"].reshape(-1))
    b_slab = jnp.stack([b0, b1, b2], axis=0)                      # [3,128] f32

    return w_slab, b_slab


# ------------------------------- forward --------------------------------------
@jax.jit
def variational_encoder_decoder(x, noise, w_slab, b_slab):
    """Fused VAE forward. Returns the packed [B,128] slab: dec | mu | std | z."""
    B = x.shape[0]
    zeros = jnp.zeros((B, Z_SIZE), jnp.float32)
    ones = jnp.ones((B, Z_SIZE), jnp.float32)
    if SAMPLE_Z:
        d_lanes = noise if EPSILON_STD == 1.0 else EPSILON_STD * noise
    else:
        d_lanes = zeros                     # z = mu, dec = decoder(mu)
    xn = jnp.concatenate([x, zeros, ones, d_lanes], axis=-1)      # [B,128] f32

    vmem = pl.BlockSpec(memory_space=pltpu.MemorySpace.VMEM)
    return pl.pallas_call(
        vae_fwd_kernel,
        out_shape=jax.ShapeDtypeStruct((B, OUT_WIDTH), jnp.float32),
        in_specs=[vmem, vmem, vmem],
        out_specs=vmem,
    )(xn, w_slab, b_slab)


def unpack_output(out_slab):
    """Lazy unpack of the [B,128] slab into the torch-module style dict."""
    return {
        "decoded": out_slab[:, 0:DEC_OUT],
        "mu": out_slab[:, MU_LO:MU_HI],
        "std": out_slab[:, STD_LO:STD_HI],
        "sampled_z": out_slab[:, Z_LO:Z_HI],
    }


def init_params(key):
    """Deterministic synthetic parameter init (shapes implied by __init__)."""
    ks = jax.random.split(key, 8)
    scale = 0.1
    return {
        "enc_w": scale * jax.random.normal(ks[0], (IN_SIZE, ENC_HID), jnp.float32),
        "enc_b": scale * jax.random.normal(ks[1], (1, ENC_HID), jnp.float32),
        "mu_w": scale * jax.random.normal(ks[2], (ENC_HID, Z_SIZE), jnp.float32),
        "mu_b": scale * jax.random.normal(ks[3], (1, Z_SIZE), jnp.float32),
        "lv_w": scale * jax.random.normal(ks[4], (ENC_HID, Z_SIZE), jnp.float32),
        "lv_b": scale * jax.random.normal(ks[5], (1, Z_SIZE), jnp.float32),
        "dec_w": scale * jax.random.normal(ks[6], (Z_SIZE, DEC_OUT), jnp.float32),
        "dec_b": scale * jax.random.normal(ks[7], (1, DEC_OUT), jnp.float32),
    }


if __name__ == "__main__":
    key = jax.random.PRNGKey(0)
    k_param, k_x, k_noise = jax.random.split(key, 3)

    params = init_params(k_param)
    # pack ONCE (outside the hot path / per-call graph)
    w_slab, b_slab = pack_params(params)

    x = jax.random.normal(k_x, (BATCH, IN_SIZE), jnp.float32)
    # deterministic N(0,1) noise for the reparameterization trick
    noise = jax.random.normal(k_noise, (BATCH, Z_SIZE), jnp.float32)

    out_slab = variational_encoder_decoder(x, noise, w_slab, b_slab)
    out_slab = jax.block_until_ready(out_slab)
    out = unpack_output(out_slab)

    # quick sanity vs. plain-JAX f32 reference (kernel matmuls use bf16
    # operands, so tolerances are relaxed accordingly)
    h_ref = jnp.maximum(x @ params["enc_w"] + params["enc_b"], 0.0)
    mu_ref = h_ref @ params["mu_w"] + params["mu_b"]
    lv_ref = h_ref @ params["lv_w"] + params["lv_b"]
    std_ref = lv_ref * lv_ref + VAR_EPS
    z_ref = mu_ref + EPSILON_STD * std_ref * noise if SAMPLE_Z else mu_ref
    dec_ref = z_ref @ params["dec_w"] + params["dec_b"]

    TOL = dict(atol=3e-2, rtol=3e-2)
    assert jnp.allclose(out["mu"], mu_ref, **TOL)
    assert jnp.allclose(out["std"], std_ref, **TOL)
    assert jnp.allclose(out["sampled_z"], z_ref, **TOL)
    assert jnp.allclose(out["decoded"], dec_ref, **TOL)

    print("KERNEL_OK")
</pallas_src>

<mosaic_0001>
module attributes {stable_mosaic.version = 11 : i64} {
  func.func @vae_fwd_kernel(%arg0: memref<8x128xf32, #tpu.memory_space<vmem>>, %arg1: memref<3x128x128xbf16, #tpu.memory_space<vmem>>, %arg2: memref<3x128xf32, #tpu.memory_space<vmem>>, %arg3: memref<8x128xf32, #tpu.memory_space<vmem>>) attributes {dimension_semantics = [], scalar_prefetch = 0 : i64, scratch_operands = 0 : i64, tpu.core_type = #tpu.core_type<tc>} {
    %c0 = arith.constant 0 : index
    %c0_0 = arith.constant 0 : index
    %0 = vector.load %arg0[%c0, %c0_0] : memref<8x128xf32, #tpu.memory_space<vmem>>, vector<8x128xf32>
    %1 = arith.truncf %0 : vector<8x128xf32> to vector<8x128xbf16>
    %c0_1 = arith.constant 0 : index
    %c0_2 = arith.constant 0 : index
    %c0_3 = arith.constant 0 : index
    %2 = vector.load %arg1[%c0_1, %c0_2, %c0_3] : memref<3x128x128xbf16, #tpu.memory_space<vmem>>, vector<1x128x128xbf16>
    %3 = vector.shape_cast %2 : vector<1x128x128xbf16> to vector<128x128xbf16>
    %cst = arith.constant dense<0.000000e+00> : vector<8x128xf32>
    %4 = tpu.matmul %1, %3, %cst {dimension_numbers = #tpu.dot_dimension_numbers<[1], [0], [0], [1], [0, 0, 1, 1], [], []>} : vector<8x128xbf16>, vector<128x128xbf16>, vector<8x128xf32> -> vector<8x128xf32>
    %c0_4 = arith.constant 0 : index
    %c0_5 = arith.constant 0 : index
    %5 = vector.load %arg2[%c0_4, %c0_5] : memref<3x128xf32, #tpu.memory_space<vmem>>, vector<1x128xf32>
    %6 = vector.broadcast %5 : vector<1x128xf32> to vector<8x128xf32>
    %7 = arith.addf %4, %6 : vector<8x128xf32>
    %cst_6 = arith.constant 0.000000e+00 : f32
    %8 = vector.broadcast %cst_6 : f32 to vector<8x128xf32>
    %9 = arith.maximumf %7, %8 : vector<8x128xf32>
    %10 = arith.truncf %9 : vector<8x128xf32> to vector<8x128xbf16>
    %c1 = arith.constant 1 : index
    %c0_7 = arith.constant 0 : index
    %c0_8 = arith.constant 0 : index
    %11 = vector.load %arg1[%c1, %c0_7, %c0_8] : memref<3x128x128xbf16, #tpu.memory_space<vmem>>, vector<1x128x128xbf16>
    %12 = vector.shape_cast %11 : vector<1x128x128xbf16> to vector<128x128xbf16>
    %cst_9 = arith.constant dense<0.000000e+00> : vector<8x128xf32>
    %13 = tpu.matmul %10, %12, %cst_9 {dimension_numbers = #tpu.dot_dimension_numbers<[1], [0], [0], [1], [0, 0, 1, 1], [], []>} : vector<8x128xbf16>, vector<128x128xbf16>, vector<8x128xf32> -> vector<8x128xf32>
    %c1_10 = arith.constant 1 : index
    %c0_11 = arith.constant 0 : index
    %14 = vector.load %arg2[%c1_10, %c0_11] : memref<3x128xf32, #tpu.memory_space<vmem>>, vector<1x128xf32>
    %15 = vector.broadcast %14 : vector<1x128xf32> to vector<8x128xf32>
    %16 = arith.addf %13, %15 : vector<8x128xf32>
    %17 = arith.mulf %16, %16 : vector<8x128xf32>
    %cst_12 = arith.constant 9.99999974E-5 : f32
    %18 = vector.broadcast %cst_12 : f32 to vector<8x128xf32>
    %19 = arith.addf %17, %18 : vector<8x128xf32>
    %20 = tpu.iota {dimensions = array<i32: 1>} : vector<8x128xi32>
    %c64_i32 = arith.constant 64 : i32
    %21 = vector.broadcast %c64_i32 : i32 to vector<8x128xi32>
    %22 = arith.cmpi slt, %20, %21 : vector<8x128xi32>
    %23 = arith.mulf %19, %0 : vector<8x128xf32>
    %24 = arith.select %22, %16, %23 : vector<8x128xi1>, vector<8x128xf32>
    %25 = arith.truncf %24 : vector<8x128xf32> to vector<8x128xbf16>
    %c2 = arith.constant 2 : index
    %c0_13 = arith.constant 0 : index
    %c0_14 = arith.constant 0 : index
    %26 = vector.load %arg1[%c2, %c0_13, %c0_14] : memref<3x128x128xbf16, #tpu.memory_space<vmem>>, vector<1x128x128xbf16>
    %27 = vector.shape_cast %26 : vector<1x128x128xbf16> to vector<128x128xbf16>
    %cst_15 = arith.constant dense<0.000000e+00> : vector<8x128xf32>
    %28 = tpu.matmul %25, %27, %cst_15 {dimension_numbers = #tpu.dot_dimension_numbers<[1], [0], [0], [1], [0, 0, 1, 1], [], []>} : vector<8x128xbf16>, vector<128x128xbf16>, vector<8x128xf32> -> vector<8x128xf32>
    %c2_16 = arith.constant 2 : index
    %c0_17 = arith.constant 0 : index
    %29 = vector.load %arg2[%c2_16, %c0_17] : memref<3x128xf32, #tpu.memory_space<vmem>>, vector<1x128xf32>
    %30 = vector.broadcast %29 : vector<1x128xf32> to vector<8x128xf32>
    %31 = arith.addf %28, %30 : vector<8x128xf32>
    %c0_18 = arith.constant 0 : index
    %c0_19 = arith.constant 0 : index
    %32 = vector.load %arg3[%c0_18, %c0_19] : memref<8x128xf32, #tpu.memory_space<vmem>>, vector<8x128xf32>
    tpu.vector_store %arg3[%c0_18, %c0_19], %31 {strides = array<i32>} : memref<8x128xf32, #tpu.memory_space<vmem>>, vector<8x128xf32>,
    return
  }
}

</mosaic_0001>

<bundles_post_ra>
// kernel: variational_encoder_decoder.1
= control target key start
LH: loop header
LB: loop body
LE: loop exit
PB: predicated region body
PF: predicated region fallthrough
CT: control target
= control target key end

     0   :  { %8 = vsyncpa [#allocation3], 0  ;;  %s521_s0 = inlined_call_operand.vmem [shape: f32[8,128], index: 0, kind: input, shape index: {}]   ;;  %s522_s1 = inlined_call_operand.hbm [shape: bf16[3,128,128], index: 1, kind: input, shape index: {}]   ;;  %s523_s2 = inlined_call_operand.vmem [shape: f32[3,128], index: 2, kind: input, shape index: {}]   ;;  %s524_s3 = inlined_call_operand.hbm [shape: f32[8,128], index: 3, kind: output, shape index: {}]  }
   0x1   :  { %9 = vsyncpa [#allocation4], 0  ;;  %s16_s14 = sshll.u32 %s522_s1, 4  ;;  %s479_s15 = smov [#allocation2]   ;;  %s17_s14 = int_to_ptr.hbm [resolvable:$true] %s16_s14 }
   0x2   :  { %s18_s16 = sshll.u32 %s479_s15, 4  ;;  %s480_s17 = smov 64   ;;  %s19_s16 = int_to_ptr.vmem [resolvable:$true] %s18_s16 }
   0x3   :  { %s481_s18 = smov 4  }
   0x4   :  { %24 = dma.hbm_to_vmem [thread:$0]  %s17_s14, 3072, %s19_s16, [#allocation3], %s480_s17, %s480_s17, %s481_s18  }
   0x5   :  { %475 = dma.done.wait [#allocation3], 3072  }
   0x6   :  { %476 = vsyncadd [#allocation3], 4294964224  ;;  %v403_v0 = vld [vmem:[#allocation2 + $0x38] sm:$0xff]  ;;  %v402_v1 = vld [vmem:[#allocation2 + $0x30] sm:$0xff]  ;;  %v196_v33 = vlaneseq  ;;  %s482_s25 = smov [#allocation5]   ;;  %s290_s29 = sshll.u32 %s524_s3, 4  ;;  %s291_s29 = int_to_ptr.hbm [resolvable:$true] %s290_s29 }
   0x7   :  { %99 = vmatpush.bf16.msra.mxu0 %v403_v0  ;;  %v411_v2 = vld [vmem:[#allocation2 + $0x78] sm:$0xff]  ;;  %v410_v3 = vld [vmem:[#allocation2 + $0x70] sm:$0xff]  ;;  %v401_v4 = vld [vmem:[#allocation2 + $0x28] sm:$0xff]  ;;  %s288_s26 = sshll.u32 %s482_s25, 4  ;;  %s289_s26 = int_to_ptr.vmem [resolvable:$true] %s288_s26 }
   0x8   :  { %181 = vmatpush.bf16.msra.mxu1 %v411_v2  ;;  %v409_v5 = vld [vmem:[#allocation2 + $0x68] sm:$0xff]  ;;  %v400_v6 = vld [vmem:[#allocation2 + $0x20] sm:$0xff]  ;;  %v399_v8 = vld [vmem:[#allocation2 + $0x18] sm:$0xff]  ;;  %v197_v36 = vand.u32 127, %v196_v33 }
   0x9   :  { %v408_v7 = vld [vmem:[#allocation2 + $0x60] sm:$0xff]  ;;  %v407_v9 = vld [vmem:[#allocation2 + $0x58] sm:$0xff]  ;;  %v398_v10 = vld [vmem:[#allocation2 + $0x10] sm:$0xff] }
   0xa   :  { %v406_v11 = vld [vmem:[#allocation2 + $0x50] sm:$0xff]  ;;  %v397_v12 = vld [vmem:[#allocation2 + $0x8] sm:$0xff]  ;;  %v396_v13 = vld [vmem:[#allocation2] sm:$0xff]  ;;  %vm198_vm0 = vcmp.lt.s32.totalorder %v197_v36, 64 }
   0xb   :  { %100 = vmatpush.bf16.msra.mxu0 %v402_v1  ;;  %v31_v14 = vld [vmem:[%s521_s0] sm:$0xff]  ;;  %v405_v16 = vld [vmem:[#allocation2 + $0x48] sm:$0xff]  ;;  %v419_v18 = vld [vmem:[#allocation2 + $0xb8] sm:$0xff] }
   0xc   :  { %182 = vmatpush.bf16.msra.mxu1 %v410_v3  ;;  %v32_v15 = vpack.c.bf16 %v31_v14, %v31_v14  ;;  %v404_v17 = vld [vmem:[#allocation2 + $0x40] sm:$0xff]  ;;  %269 = vmatpush.bf16.msra.mxu2 %v419_v18  ;;  %v418_v19 = vld [vmem:[#allocation2 + $0xb0] sm:$0xff]  ;;  %v417_v20 = vld [vmem:[#allocation2 + $0xa8] sm:$0xff] }
   0xd   :  { %v416_v21 = vld [vmem:[#allocation2 + $0xa0] sm:$0xff]  ;;  %v415_v22 = vld [vmem:[#allocation2 + $0x98] sm:$0xff]  ;;  %v414_v29 = vld [vmem:[#allocation2 + $0x90] sm:$0xff] }
   0xe   :  { %v424_v23 = vld [vmem:[%s523_s2] ss:$0 sm:$0xff]  ;;  %v413_v30 = vld [vmem:[#allocation2 + $0x88] sm:$0xff]  ;;  %v425_v32 = vld [vmem:[%s523_s2 + $0x1] ss:$0 sm:$0xff] }
   0xf   :  { %101 = vmatpush.bf16.msra.mxu0 %v401_v4  ;;  %v412_v31 = vld [vmem:[#allocation2 + $0x80] sm:$0xff] }
  0x10   :  { %183 = vmatpush.bf16.msra.mxu1 %v409_v5  ;;  %270 = vmatpush.bf16.msra.mxu2 %v418_v19  ;;  %v426_v43 = vld [vmem:[%s523_s2 + $0x2] ss:$0 sm:$0xff] }
  0x13   :  { %102 = vmatpush.bf16.msra.mxu0 %v400_v6 }
  0x14   :  { %184 = vmatpush.bf16.msra.mxu1 %v408_v7  ;;  %271 = vmatpush.bf16.msra.mxu2 %v417_v20 }
  0x17   :  { %103 = vmatpush.bf16.msra.mxu0 %v399_v8 }
  0x18   :  { %185 = vmatpush.bf16.msra.mxu1 %v407_v9  ;;  %272 = vmatpush.bf16.msra.mxu2 %v416_v21 }
  0x1b   :  { %104 = vmatpush.bf16.msra.mxu0 %v398_v10 }
  0x1c   :  { %186 = vmatpush.bf16.msra.mxu1 %v406_v11  ;;  %273 = vmatpush.bf16.msra.mxu2 %v415_v22 }
  0x1f   :  { %105 = vmatpush.bf16.msra.mxu0 %v397_v12 }
  0x20   :  { %187 = vmatpush.bf16.msra.mxu1 %v405_v16  ;;  %274 = vmatpush.bf16.msra.mxu2 %v414_v29 }
  0x23   :  { %106 = vmatpush.bf16.msra.mxu0 %v396_v13 }
  0x24   :  { %188 = vmatpush.bf16.msra.mxu1 %v404_v17  ;;  %275 = vmatpush.bf16.msra.mxu2 %v413_v30 }
  0x26   :  { %107 = vmatmul.bf16.vlgmr.msra.gmra.mxu0 %v32_v15 }
  0x28   :  { %276 = vmatpush.bf16.msra.mxu2 %v412_v31 }
  0xa3   :  { %v108_v24 = vpop.f32.mrf.mxu0 }
  0xa4   :  { %v109_v25 = vadd.f32 %v424_v23, %v108_v24 }
  0xa6   :  { %v112_v26 = vmax.f32 %v109_v25, 0.0 }
  0xa8   :  { %v113_v27 = vpack.c.bf16 %v112_v26, %v112_v26 }
  0xaa   :  { %189 = vmatmul.bf16.vlgmr.msra.gmra.mxu1 %v113_v27 }
  0xab   :  { %v110_v28 = vpop.f32.mrf.mxu0 }
 0x127   :  { %v190_v34 = vpop.f32.mrf.mxu1 }
 0x128   :  { %v191_v35 = vadd.f32 %v425_v32, %v190_v34 }
 0x12a   :  { %v194_v37 = vmul.f32 %v191_v35, %v191_v35 }
 0x12c   :  { %v195_v38 = vadd.f32 0.0001, %v194_v37 }
 0x12e   :  { %v199_v39 = vmul.f32 %v195_v38, %v31_v14 }
 0x12f   :  { %v192_v40 = vpop.f32.mrf.mxu1 }
 0x130   :  { %v200_v41 = vsel %vm198_vm0, %v191_v35, %v199_v39 }
 0x131   :  { %v201_v42 = vpack.c.bf16 %v200_v41, %v200_v41 }
 0x133   :  { %277 = vmatmul.bf16.vlgmr.msra.gmra.mxu2 %v201_v42 }
 0x1b6   :  { %v278_v44 = vpop.f32.mrf.mxu2 }
 0x1b7   :  { %v279_v45 = vadd.f32 %v426_v43, %v278_v44 }
 0x1b9   :  { %282 = vst [vmem:[#allocation5] sm:$0xff] %v279_v45 }
 0x1ba   :  { %293 = dma.vmem_to_hbm [thread:$0]  %s289_s26, 128, %s291_s29, [#allocation4]  }
 0x1be   :  { %v280_v46 = vpop.f32.mrf.mxu2 }
 0x1bf   :  { %477 = dma.done.wait [#allocation4], 128  }
 0x1c0   :  { %478 = vsyncadd [#allocation4], 4294967168 }
 0x1c1   :  { %298 = vsyncpa [#allocation3], 1 }
 0x1c2   :  { %299 = vsyncpa [#allocation4], 1 }

</bundles_post_ra>
